<compile_context>
chip_gen: v7x
topology: tpu7x:2x2x1
jax: 0.10.0
libtpu: 0.0.40
codegen_flags: <defaults>
</compile_context>

<pallas_src>
import functools
import math
from typing import NamedTuple, Optional

import jax
import jax.numpy as jnp
from jax.experimental import pallas as pl
from jax.experimental.pallas import tpu as pltpu


def _round_up(x: int, m: int) -> int:
    return ((x + m - 1) // m) * m


class LinearClassifierParams(NamedTuple):
    """Pre-transposed, pre-padded parameters (built once, reused every call)."""
    w_padded: jax.Array   # (F_pad, C_pad), optionally bf16
    b_padded: jax.Array   # (1, C_pad), float32
    in_features: int      # F (un-padded)
    num_classes: int      # C (un-padded)
    tn: int               # class-tile width; divides C_pad


def prepare_linear_params(weight, bias, *, max_tn: int = 512, param_dtype=None):
    """Transpose torch-layout (C, F) weight to (F, C) and zero-pad ONCE.

    param_dtype=jnp.bfloat16 halves the dominant weight HBM stream (f32
    accumulation inside the kernel is unchanged).
    """
    weight = jnp.asarray(weight)
    bias = jnp.asarray(bias)
    C, F = weight.shape
    F_pad = _round_up(F, 128)
    tn = min(max_tn, _round_up(C, 128))
    C_pad = _round_up(C, tn)

    w_t = weight.T                                  # (F, C), done once
    if param_dtype is not None:
        w_t = w_t.astype(param_dtype)
    w_padded = jnp.pad(w_t, ((0, F_pad - F), (0, C_pad - C)))
    b_padded = jnp.pad(bias.astype(jnp.float32).reshape(1, C),
                       ((0, 0), (0, C_pad - C)))
    return LinearClassifierParams(w_padded, b_padded, F, C, tn)


def _linear_kernel(x_ref, w_ref, b_ref, o_ref):
    """One (tm, tn) output tile: full-F dot on the MXU + f32 bias add."""
    acc = jnp.dot(x_ref[...], w_ref[...], preferred_element_type=jnp.float32)
    o_ref[...] = (acc + b_ref[...]).astype(o_ref.dtype)


@functools.partial(
    jax.jit, static_argnames=("tm", "tn", "num_classes", "out_dtype"))
def _linear_pallas(x, w_padded, b_padded, *, tm, tn, num_classes, out_dtype):
    B, F = x.shape
    F_pad, C_pad = w_padded.shape
    B_pad = _round_up(B, tm)

    # Only the small activation is padded per call; padded-F rows of the
    # (already padded) weight are zero, so they contribute exactly 0.
    if B_pad != B or F_pad != F:
        x = jnp.pad(x, ((0, B_pad - B), (0, F_pad - F)))

    grid = (B_pad // tm, C_pad // tn)

    out = pl.pallas_call(
        _linear_kernel,
        out_shape=jax.ShapeDtypeStruct((B_pad, C_pad), out_dtype),
        grid=grid,
        in_specs=[
            # x block depends only on i -> stays VMEM-resident across all
            # class tiles (no re-streaming per j).
            pl.BlockSpec((tm, F_pad), lambda i, j: (i, 0)),
            # Full-F weight strip: no K grid axis, streamed once per (i, j).
            pl.BlockSpec((F_pad, tn), lambda i, j: (0, j)),
            pl.BlockSpec((1, tn), lambda i, j: (0, j)),
        ],
        out_specs=pl.BlockSpec((tm, tn), lambda i, j: (i, j)),
        compiler_params=pltpu.CompilerParams(
            dimension_semantics=("parallel", "parallel"),
            # Explicit budget: tiles (~13 MiB f32 @ F=2K, tn=512, tm=256) fit
            # comfortably on v5e/v6e (128 MiB) and v7x (64 MiB physical).
            vmem_limit_bytes=48 * 1024 * 1024,
        ),
    )(x, w_padded, b_padded)

    return out[:B, :num_classes]


def linear_classifier_forward(
    input_values,
    params: LinearClassifierParams,
    labels: Optional[jax.Array] = None,  # accepted (like torch) but unused
    *,
    tm: int = 256,
    out_dtype=jnp.float32,
):
    """Pallas equivalent of LinearClassifier.forward.

    input_values: (B, 1, F) or (B, F); returns (B, C) logits (f32 by default,
    matching torch).
    """
    del labels
    x = input_values
    if x.ndim == 3:
        assert x.shape[1] == 1, "expected singleton dim 1 (implied by .squeeze(1))"
        x = x.reshape(x.shape[0], x.shape[2])
    B, F = x.shape
    assert F == params.in_features, (F, params.in_features)

    # Keep the whole batch in a single tile whenever it fits (typical case:
    # B <= 256) so the weight is streamed from HBM exactly once.
    B_pad = _round_up(B, 8)
    tm_eff = B_pad if B_pad <= tm else tm

    return _linear_pallas(
        x, params.w_padded, params.b_padded,
        tm=tm_eff, tn=params.tn, num_classes=params.num_classes,
        out_dtype=out_dtype,
    )


def init_params(key, num_classes, in_features, dtype=jnp.float32):
    """nn.Linear-style init: uniform(-k, k), k = 1/sqrt(in_features)."""
    k_w, k_b = jax.random.split(key)
    bound = 1.0 / math.sqrt(in_features)
    weight = jax.random.uniform(
        k_w, (num_classes, in_features), dtype=dtype, minval=-bound, maxval=bound)
    bias = jax.random.uniform(
        k_b, (num_classes,), dtype=dtype, minval=-bound, maxval=bound)
    return weight, bias


if __name__ == "__main__":
    key = jax.random.PRNGKey(0)
    k_x, k_p, k_x2, k_p2 = jax.random.split(key, 4)

    # --- small shape matching the module's (B, 1, F) pooled-embedding input ---
    B, F, C = 2, 32, 8
    x = jax.random.normal(k_x, (B, 1, F), dtype=jnp.float32)
    weight, bias = init_params(k_p, C, F)

    params = prepare_linear_params(weight, bias)          # padded/transposed once
    y = jax.block_until_ready(linear_classifier_forward(x, params))
    ref = x.reshape(B, F) @ weight.T + bias
    assert y.shape == (B, C)
    assert jnp.allclose(y, ref, atol=2e-2, rtol=0.0), float(jnp.max(jnp.abs(y - ref)))

    # --- multi-tile check with a bf16 weight/activation stream, f32 output ---
    B2, F2, C2 = 48, 384, 1000   # C_pad=1024 -> two class tiles; single batch tile
    x2 = jax.random.normal(k_x2, (B2, 1, F2), dtype=jnp.float32)
    w2, b2 = init_params(k_p2, C2, F2)

    params2 = prepare_linear_params(w2, b2, param_dtype=jnp.bfloat16)
    x2_bf16 = x2.astype(jnp.bfloat16)
    y2 = jax.block_until_ready(linear_classifier_forward(x2_bf16, params2))
    ref2 = (x2_bf16.astype(jnp.float32).reshape(B2, F2)
            @ w2.astype(jnp.bfloat16).astype(jnp.float32).T + b2)
    assert y2.shape == (B2, C2)
    assert y2.dtype == jnp.float32
    assert jnp.allclose(y2, ref2, atol=3e-2, rtol=0.0), float(jnp.max(jnp.abs(y2 - ref2)))

    print("KERNEL_OK")
</pallas_src>

<mosaic_0001>
module attributes {stable_mosaic.version = 11 : i64} {
  func.func @_linear_kernel(%arg0: i32, %arg1: i32, %arg2: memref<8x128xf32, #tpu.memory_space<vmem>>, %arg3: memref<128x128xf32, #tpu.memory_space<vmem>>, %arg4: memref<1x128xf32, #tpu.memory_space<vmem>>, %arg5: memref<8x128xf32, #tpu.memory_space<vmem>>) attributes {dimension_semantics = [#tpu.dimension_semantics<parallel>, #tpu.dimension_semantics<parallel>], iteration_bounds = array<i64: 1, 1>, scalar_prefetch = 0 : i64, scratch_operands = 0 : i64, tpu.core_type = #tpu.core_type<tc>, window_params = [{transform_indices = @transform_0, window_bounds = array<i64: 8, 128>}, {transform_indices = @transform_1, window_bounds = array<i64: 128, 128>}, {transform_indices = @transform_2, window_bounds = array<i64: 1, 128>}, {transform_indices = @transform_3, window_bounds = array<i64: 8, 128>}]} {
    %c0 = arith.constant 0 : index
    %c0_0 = arith.constant 0 : index
    %0 = vector.load %arg2[%c0, %c0_0] : memref<8x128xf32, #tpu.memory_space<vmem>>, vector<8x128xf32>
    %c0_1 = arith.constant 0 : index
    %c0_2 = arith.constant 0 : index
    %1 = vector.load %arg3[%c0_1, %c0_2] : memref<128x128xf32, #tpu.memory_space<vmem>>, vector<128x128xf32>
    %cst = arith.constant dense<0.000000e+00> : vector<8x128xf32>
    %2 = tpu.matmul %0, %1, %cst {dimension_numbers = #tpu.dot_dimension_numbers<[1], [0], [0], [1], [0, 0, 1, 1], [], []>} : vector<8x128xf32>, vector<128x128xf32>, vector<8x128xf32> -> vector<8x128xf32>
    %c0_3 = arith.constant 0 : index
    %c0_4 = arith.constant 0 : index
    %3 = vector.load %arg4[%c0_3, %c0_4] : memref<1x128xf32, #tpu.memory_space<vmem>>, vector<1x128xf32>
    %4 = vector.broadcast %3 : vector<1x128xf32> to vector<8x128xf32>
    %5 = arith.addf %2, %4 : vector<8x128xf32>
    %c0_5 = arith.constant 0 : index
    %c0_6 = arith.constant 0 : index
    %6 = vector.load %arg5[%c0_5, %c0_6] : memref<8x128xf32, #tpu.memory_space<vmem>>, vector<8x128xf32>
    tpu.vector_store %arg5[%c0_5, %c0_6], %5 {strides = array<i32>} : memref<8x128xf32, #tpu.memory_space<vmem>>, vector<8x128xf32>,
    return
  }
  func.func @transform_0(%arg0: i32, %arg1: i32) -> (i32, i32) {
    %c0_i32 = arith.constant 0 : i32
    %c0_i32_0 = arith.constant 0 : i32
    return %arg0, %c0_i32 : i32, i32
  }
  func.func @transform_1(%arg0: i32, %arg1: i32) -> (i32, i32) {
    %c0_i32 = arith.constant 0 : i32
    %c0_i32_0 = arith.constant 0 : i32
    return %c0_i32, %arg1 : i32, i32
  }
  func.func @transform_2(%arg0: i32, %arg1: i32) -> (i32, i32) {
    %c0_i32 = arith.constant 0 : i32
    %c0_i32_0 = arith.constant 0 : i32
    return %c0_i32, %arg1 : i32, i32
  }
  func.func @transform_3(%arg0: i32, %arg1: i32) -> (i32, i32) {
    %c0_i32 = arith.constant 0 : i32
    return %arg0, %arg1 : i32, i32
  }
}

</mosaic_0001>

<bundles_post_ra>
// kernel: _linear_pallas.1
= control target key start
LH: loop header
LB: loop body
LE: loop exit
PB: predicated region body
PF: predicated region fallthrough
CT: control target
= control target key end

     0   :  { %8 = vsyncpa [#allocation3], 0  ;;  %s235_s12 = smov [#allocation2]   ;;  %s282_s0 = inlined_call_operand.vmem [shape: f32[8,128], index: 0, kind: input, shape index: {}]   ;;  %s283_s1 = inlined_call_operand.hbm [shape: f32[128,128], index: 1, kind: input, shape index: {}]   ;;  %s284_s2 = inlined_call_operand.vmem [shape: f32[1,128], index: 2, kind: input, shape index: {}]   ;;  %s285_s3 = inlined_call_operand.vmem [shape: f32[8,128], index: 3, kind: output, shape index: {}]  }
   0x1   :  { %s16_s13 = sshll.u32 %s235_s12, 4  ;;  %s211_s16 = scalar_lea.hbm %s283_s1, 2048  ;;  %s17_s13 = int_to_ptr.vmem [resolvable:$true] %s16_s13 }
   0x2   :  { %p212_p0 = scmp.ne.s32.totalorder %s283_s1, %s211_s16  ;;  %p215_p1 = scmp.lt.u32.totalorder %s211_s16, %s283_s1 }
   0x4   :  { %p217_p2 = pnand %p215_p1, %p212_p0 }
   0x6   :  { %220 = shalt.err (!%p217_p2)
}
   0x7   :  { %s221_s21 = scalar_lea.vmem %s17_s13, 2048  ;;  %p226_p4 = scmp.lt.s32.totalorder %s17_s13, %s17_s13 }
   0x8   :  { %p222_p3 = scmp.ne.s32.totalorder %s17_s13, %s221_s21  ;;  %p227_p5 = scmp.lt.s32.totalorder %s221_s21, %s221_s21 }
   0xa   :  { %p228_p6 = por %p227_p5, %p226_p4 }
   0xc   :  { %p229_p7 = pnand %p228_p6, %p222_p3 }
   0xe   :  { %232 = shalt.err (!%p229_p7)
}
   0xf   :  { %s236_s22 = smov 128   ;;  %s237_s23 = smov 8  }
  0x10   :  { %22 = dma.hbm_to_vmem [thread:$0]  %s283_s1, 2048, %s17_s13, [#allocation3], %s236_s22, %s236_s22, %s237_s23  }
  0x11   :  { %233 = dma.done.wait [#allocation3], 2048  }
  0x12   :  { %234 = vsyncadd [#allocation3], 4294965248  ;;  %v238_v0 = vmov 0.0|0.0   ;;  %vm239_vm0 = vmmov 0   ;;  %v240_v1 = vmov 0.0   ;;  %v29_v2 = vld [vmem:[#allocation2] sm:$0xff] }
  0x13   :  { %181 = vmatprep.subr.bf16.mxu0 %v238_v0  ;;  %178 = vmatprep.mubr.msk.f32.mxu0 %vm239_vm0, %v240_v1  ;;  %v30_v3 = vld [vmem:[#allocation2 + $0x8] sm:$0xff]  ;;  %v31_v4 = vld [vmem:[#allocation2 + $0x10] sm:$0xff]  ;;  %v32_v6 = vld [vmem:[#allocation2 + $0x18] sm:$0xff] }
  0x14   :  { %v182_v5 = vpack.c.bf16 %v30_v3, %v29_v2  ;;  %v185_v7 = vpack.c.bf16 %v32_v6, %v31_v4  ;;  %v33_v8 = vld [vmem:[#allocation2 + $0x20] sm:$0xff]  ;;  %v34_v9 = vld [vmem:[#allocation2 + $0x28] sm:$0xff]  ;;  %v35_v11 = vld [vmem:[#allocation2 + $0x30] sm:$0xff] }
  0x15   :  { %v188_v10 = vpack.c.bf16 %v34_v9, %v33_v8  ;;  %v36_v12 = vld [vmem:[#allocation2 + $0x38] sm:$0xff]  ;;  %v37_v14 = vld [vmem:[#allocation2 + $0x40] sm:$0xff]  ;;  %v38_v15 = vld [vmem:[#allocation2 + $0x48] sm:$0xff] }
  0x16   :  { %183 = vmatpush3.bf16.msra.mxu0 %v182_v5  ;;  %v191_v13 = vpack.c.bf16 %v36_v12, %v35_v11  ;;  %v194_v16 = vpack.c.bf16 %v38_v15, %v37_v14  ;;  %v39_v17 = vld [vmem:[#allocation2 + $0x50] sm:$0xff]  ;;  %v40_v18 = vld [vmem:[#allocation2 + $0x58] sm:$0xff]  ;;  %v41_v20 = vld [vmem:[#allocation2 + $0x60] sm:$0xff] }
  0x17   :  { %184 = vmatprep.subr.bf16.mxu0 %v238_v0  ;;  %v197_v19 = vpack.c.bf16 %v40_v18, %v39_v17  ;;  %v42_v21 = vld [vmem:[#allocation2 + $0x68] sm:$0xff]  ;;  %v43_v23 = vld [vmem:[#allocation2 + $0x70] sm:$0xff]  ;;  %v44_v24 = vld [vmem:[#allocation2 + $0x78] sm:$0xff] }
  0x18   :  { %v200_v22 = vpack.c.bf16 %v42_v21, %v41_v20  ;;  %v203_v25 = vpack.c.bf16 %v44_v24, %v43_v23  ;;  %v28_v26 = vld [vmem:[%s282_s0] sm:$0xff] }
  0x19   :  { %v128_v27 = vld [vmem:[%s284_s2] ss:$0 sm:$0xff] }
  0x1a   :  { %186 = vmatpush3.bf16.msra.mxu0 %v185_v7 }
  0x1b   :  { %187 = vmatprep.subr.bf16.mxu0 %v238_v0 }
  0x1e   :  { %189 = vmatpush3.bf16.msra.mxu0 %v188_v10 }
  0x1f   :  { %190 = vmatprep.subr.bf16.mxu0 %v238_v0 }
  0x22   :  { %192 = vmatpush3.bf16.msra.mxu0 %v191_v13 }
  0x23   :  { %193 = vmatprep.subr.bf16.mxu0 %v238_v0 }
  0x26   :  { %195 = vmatpush3.bf16.msra.mxu0 %v194_v16 }
  0x27   :  { %196 = vmatprep.subr.bf16.mxu0 %v238_v0 }
  0x2a   :  { %198 = vmatpush3.bf16.msra.mxu0 %v197_v19 }
  0x2b   :  { %199 = vmatprep.subr.bf16.mxu0 %v238_v0 }
  0x2e   :  { %201 = vmatpush3.bf16.msra.mxu0 %v200_v22 }
  0x2f   :  { %202 = vmatprep.subr.bf16.mxu0 %v238_v0 }
  0x32   :  { %204 = vmatpush3.bf16.msra.mxu0 %v203_v25 }
  0x35   :  { %179 = vmatmul.mubr.f32.vlgmr.msra.gmra.mrb[0].mxu0 %v28_v26 }
 0x108   :  { %v118_v28 = vpop.f32.mrb[0].mxu0 }
 0x109   :  { %v119_v29 = vadd.f32 %v128_v27, %v118_v28  ;;  %v180_v30 = vpop.f32.mrb[1].mxu0 }
 0x10b   :  { %122 = vst [vmem:[%s285_s3] sm:$0xff] %v119_v29 }
 0x10c   :  { %127 = vsyncpa [#allocation3], 1 }

</bundles_post_ra>
